<compile_context>
chip_gen: v5e
topology: v5e:2x2
jax: 0.10.0
libtpu: 0.0.40
codegen_flags: <defaults>
</compile_context>

<pallas_src>
import functools

import jax
import jax.numpy as jnp
from jax import lax
from jax.experimental import pallas as pl
from jax.experimental.pallas import tpu as pltpu

_EPS = 1e-3  # dice smooth term (SOLO-style: +0.001 on each denominator term)


def _dice_hd_kernel(pred_ref, target_ref, dice_ref, hd_ref,
                    acc_a, acc_b, *, hw, tile_hw, inv_hw, needs_mask):
    """grid = (batch_block [parallel], hw_tile [arbitrary reduction])."""
    k = pl.program_id(1)

    p = jax.nn.sigmoid(pred_ref[...].astype(jnp.float32))   # (SUB, TILE_HW) f32
    t = target_ref[...].astype(jnp.float32)                 # (SUB, TILE_HW) f32

    if needs_mask:
        # Trailing partial tile: lanes past hw hold unspecified data -> select 0
        # (jnp.where is a select, so garbage/NaN pad lanes cannot propagate).
        lane = lax.broadcasted_iota(jnp.int32, p.shape, 1)
        valid = (k * tile_hw + lane) < hw
        p = jnp.where(valid, p, 0.0)
        t = jnp.where(valid, t, 0.0)

    # Per-tile lane reductions (XLU) into narrow per-row partial sums.
    sa = jnp.sum(p * t, axis=-1, keepdims=True)             # sum p*t        (SUB,1)
    sb = jnp.sum(p * p + t, axis=-1, keepdims=True)         # sum p*p + t    (SUB,1)

    @pl.when(k == 0)
    def _init():
        acc_a[...] = sa
        acc_b[...] = sb

    @pl.when(k > 0)
    def _accum():
        acc_a[...] += sa
        acc_b[...] += sb

    @pl.when(k == pl.num_programs(1) - 1)
    def _finalize():
        a = acc_a[...]
        b = acc_b[...]
        dice_ref[...] = 1.0 - 2.0 * a / (b + 2.0 * _EPS)
        hd_ref[...] = (b - 2.0 * a) * inv_hw                 # mean (p-t)^2


def _round_up(x, m):
    return (x + m - 1) // m * m


def _sublane_for(*dtypes):
    """Sublane block size matching the widest packing among the input dtypes."""
    sub = 8
    for dt in dtypes:
        sub = max(sub, 32 // jnp.dtype(dt).itemsize)   # f32->8, bf16->16, int8->32
    return sub


def _per_sample_dice_hd(pred2, target2, *, max_tile=8192):
    """pred2/target2: (N, HW) in native dtypes. Returns per-sample (dice_i, hd_i)."""
    n, hw = pred2.shape
    sub = _sublane_for(pred2.dtype, target2.dtype)
    npad = _round_up(n, sub)

    if hw <= max_tile:
        tile_hw = hw            # full-row block: exempt from the 128 rule, no HW pad
    else:
        tile_hw = max_tile      # multiple of 128
    num_tiles = pl.cdiv(hw, tile_hw)
    needs_mask = (num_tiles * tile_hw != hw)

    if npad != n:
        # Only the cheap batch dim is padded (zeros are harmless: padded rows
        # produce finite garbage values that are sliced off below).
        pred2 = jnp.pad(pred2, ((0, npad - n), (0, 0)))
        target2 = jnp.pad(target2, ((0, npad - n), (0, 0)))

    kernel = functools.partial(_dice_hd_kernel, hw=hw, tile_hw=tile_hw,
                               inv_hw=1.0 / float(hw), needs_mask=needs_mask)

    dice_i, hd_i = pl.pallas_call(
        kernel,
        out_shape=(jax.ShapeDtypeStruct((npad, 1), jnp.float32),
                   jax.ShapeDtypeStruct((npad, 1), jnp.float32)),
        grid_spec=pltpu.PrefetchScalarGridSpec(
            num_scalar_prefetch=0,
            grid=(npad // sub, num_tiles),
            in_specs=[
                pl.BlockSpec((sub, tile_hw), lambda i, k: (i, k)),
                pl.BlockSpec((sub, tile_hw), lambda i, k: (i, k)),
            ],
            out_specs=[
                pl.BlockSpec((sub, 1), lambda i, k: (i, 0)),
                pl.BlockSpec((sub, 1), lambda i, k: (i, 0)),
            ],
            scratch_shapes=[
                pltpu.VMEM((sub, 1), jnp.float32),   # acc sum(p*t)
                pltpu.VMEM((sub, 1), jnp.float32),   # acc sum(p*p) + sum(t)
            ],
        ),
        compiler_params=pltpu.CompilerParams(
            dimension_semantics=("parallel", "arbitrary")),
    )(pred2, target2)
    return dice_i[:n, 0], hd_i[:n, 0]


@functools.partial(jax.jit, static_argnames=("strategy",))
def _dice_hd_forward(pred, target, label, alpha, *, strategy):
    n = pred.shape[0]
    hw = 1
    for d in pred.shape[1:]:
        hw *= d
    pred2 = pred.reshape(n, hw)
    target2 = target.reshape(n, hw)

    dice_i, hd_i = _per_sample_dice_hd(pred2, target2)

    w = label.astype(jnp.float32)
    denom = jnp.sum(w) + 1e-6
    dice_loss = jnp.sum(w * dice_i) / denom
    hd_loss = jnp.sum(w * hd_i) / denom

    alpha = alpha.astype(jnp.float32)
    if strategy == "rebalance":
        return (1.0 - alpha) * dice_loss + alpha * hd_loss
    return dice_loss + alpha * hd_loss     # 'constant' / 'increase'


class DiceHDLoss:
    """JAX/Pallas re-implementation of Dice_HD_Loss (forward only)."""

    def __init__(self, start_alpha, step_alpha, max_alpha, alpha_strategy):
        self.start_alpha = float(start_alpha)
        self.step_alpha = float(step_alpha)
        self.max_alpha = float(max_alpha)
        self.alpha_strategy = alpha_strategy
        self.count_iter = 0

    def _cur_alpha(self):
        cur_alpha = self.start_alpha + int(self.count_iter / 1120) * self.step_alpha
        if cur_alpha > self.max_alpha:
            cur_alpha = self.max_alpha
        return cur_alpha

    def __call__(self, pred, target, label):
        # alpha is a runtime scalar (no recompile when the schedule changes it).
        alpha = jnp.asarray(self._cur_alpha(), dtype=jnp.float32)
        self.count_iter += 1
        return _dice_hd_forward(pred, target, label, alpha,
                                strategy=self.alpha_strategy)


def _reference(pred, target, label, alpha, strategy):
    """Pure-JAX reference of the same math, for a correctness check."""
    n = pred.shape[0]
    p = jax.nn.sigmoid(pred.reshape(n, -1).astype(jnp.float32))
    t = target.reshape(n, -1).astype(jnp.float32)
    hw = p.shape[1]
    sa = jnp.sum(p * t, axis=1)
    sb = jnp.sum(p * p, axis=1)
    sc = jnp.sum(t * t, axis=1)
    dice_i = 1.0 - 2.0 * sa / (sb + sc + 2.0 * _EPS)
    hd_i = jnp.sum((p - t) ** 2, axis=1) / hw
    w = label.astype(jnp.float32)
    denom = jnp.sum(w) + 1e-6
    dice_loss = jnp.sum(w * dice_i) / denom
    hd_loss = jnp.sum(w * hd_i) / denom
    if strategy == "rebalance":
        return (1.0 - alpha) * dice_loss + alpha * hd_loss
    return dice_loss + alpha * hd_loss


if __name__ == "__main__":
    key = jax.random.PRNGKey(0)
    k1, k2 = jax.random.split(key)

    N, H, W = 2, 16, 16
    # Native-dtype inputs: bf16 mask logits, int8 binary GT, f32 per-sample weight.
    pred = jax.random.normal(k1, (N, H, W), dtype=jnp.float32).astype(jnp.bfloat16)
    target = (jax.random.uniform(k2, (N, H, W)) > 0.5).astype(jnp.int8)
    label = jnp.ones((N,), dtype=jnp.float32)

    loss_mod = DiceHDLoss(start_alpha=0.1, step_alpha=0.05, max_alpha=0.5,
                          alpha_strategy="rebalance")
    out = loss_mod(pred, target, label)
    out = jax.block_until_ready(out)

    ref = _reference(pred, target, label, alpha=0.1, strategy="rebalance")
    assert jnp.allclose(out, ref, atol=1e-4, rtol=1e-4), (out, ref)

    print("KERNEL_OK")
</pallas_src>

<mosaic_0001>
module attributes {stable_mosaic.version = 11 : i64} {
  func.func @_dice_hd_kernel(%arg0: i32, %arg1: i32, %arg2: memref<32x256xbf16, #tpu.memory_space<vmem>>, %arg3: memref<32x256xi8, #tpu.memory_space<vmem>>, %arg4: memref<32x1xf32, #tpu.memory_space<vmem>>, %arg5: memref<32x1xf32, #tpu.memory_space<vmem>>, %arg6: memref<32x1xf32, #tpu.memory_space<vmem>>, %arg7: memref<32x1xf32, #tpu.memory_space<vmem>>) attributes {dimension_semantics = [#tpu.dimension_semantics<parallel>, #tpu.dimension_semantics<arbitrary>], iteration_bounds = array<i64: 1, 1>, scalar_prefetch = 0 : i64, scratch_operands = 2 : i64, tpu.core_type = #tpu.core_type<tc>, window_params = [{transform_indices = @transform_0, window_bounds = array<i64: 32, 256>}, {transform_indices = @transform_1, window_bounds = array<i64: 32, 256>}, {transform_indices = @transform_2, window_bounds = array<i64: 32, 1>}, {transform_indices = @transform_3, window_bounds = array<i64: 32, 1>}]} {
    %c0 = arith.constant 0 : index
    %c0_0 = arith.constant 0 : index
    %0 = vector.load %arg2[%c0, %c0_0] : memref<32x256xbf16, #tpu.memory_space<vmem>>, vector<32x256xbf16>
    %1 = arith.extf %0 : vector<32x256xbf16> to vector<32x256xf32>
    %2 = arith.negf %1 : vector<32x256xf32>
    %3 = math.exp %2 : vector<32x256xf32>
    %cst = arith.constant 1.000000e+00 : f32
    %4 = vector.broadcast %cst : f32 to vector<32x256xf32>
    %5 = arith.addf %4, %3 : vector<32x256xf32>
    %6 = arith.divf %4, %5 : vector<32x256xf32>
    %c0_1 = arith.constant 0 : index
    %c0_2 = arith.constant 0 : index
    %7 = vector.load %arg3[%c0_1, %c0_2] : memref<32x256xi8, #tpu.memory_space<vmem>>, vector<32x256xi8>
    %8 = arith.sitofp %7 : vector<32x256xi8> to vector<32x256xf32>
    %9 = arith.mulf %6, %8 : vector<32x256xf32>
    %cst_3 = arith.constant dense<0.000000e+00> : vector<32xf32>
    %10 = vector.multi_reduction <add>, %9, %cst_3 [1] : vector<32x256xf32> to vector<32xf32>
    %11 = vector.shape_cast %10 : vector<32xf32> to vector<32x1xf32>
    %12 = arith.mulf %6, %6 : vector<32x256xf32>
    %13 = arith.addf %12, %8 : vector<32x256xf32>
    %cst_4 = arith.constant dense<0.000000e+00> : vector<32xf32>
    %14 = vector.multi_reduction <add>, %13, %cst_4 [1] : vector<32x256xf32> to vector<32xf32>
    %15 = vector.shape_cast %14 : vector<32xf32> to vector<32x1xf32>
    %c0_i32 = arith.constant 0 : i32
    %16 = arith.cmpi eq, %arg1, %c0_i32 : i32
    %17 = arith.extui %16 : i1 to i32
    %c0_i32_5 = arith.constant 0 : i32
    %18 = arith.cmpi ne, %17, %c0_i32_5 : i32
    scf.if %18 {
      %c0_10 = arith.constant 0 : index
      %c0_11 = arith.constant 0 : index
      %25 = vector.load %arg6[%c0_10, %c0_11] : memref<32x1xf32, #tpu.memory_space<vmem>>, vector<32x1xf32>
      tpu.vector_store %arg6[%c0_10, %c0_11], %11 {strides = array<i32>} : memref<32x1xf32, #tpu.memory_space<vmem>>, vector<32x1xf32>,
      %c0_12 = arith.constant 0 : index
      %c0_13 = arith.constant 0 : index
      %26 = vector.load %arg7[%c0_12, %c0_13] : memref<32x1xf32, #tpu.memory_space<vmem>>, vector<32x1xf32>
      tpu.vector_store %arg7[%c0_12, %c0_13], %15 {strides = array<i32>} : memref<32x1xf32, #tpu.memory_space<vmem>>, vector<32x1xf32>,
    } else {
    }
    %c0_i32_6 = arith.constant 0 : i32
    %19 = arith.cmpi sgt, %arg1, %c0_i32_6 : i32
    %20 = arith.extui %19 : i1 to i32
    %c0_i32_7 = arith.constant 0 : i32
    %21 = arith.cmpi ne, %20, %c0_i32_7 : i32
    scf.if %21 {
      %c0_10 = arith.constant 0 : index
      %c0_11 = arith.constant 0 : index
      %25 = vector.load %arg6[%c0_10, %c0_11] : memref<32x1xf32, #tpu.memory_space<vmem>>, vector<32x1xf32>
      %26 = arith.addf %25, %11 : vector<32x1xf32>
      %c0_12 = arith.constant 0 : index
      %c0_13 = arith.constant 0 : index
      %27 = vector.load %arg6[%c0_12, %c0_13] : memref<32x1xf32, #tpu.memory_space<vmem>>, vector<32x1xf32>
      tpu.vector_store %arg6[%c0_12, %c0_13], %26 {strides = array<i32>} : memref<32x1xf32, #tpu.memory_space<vmem>>, vector<32x1xf32>,
      %c0_14 = arith.constant 0 : index
      %c0_15 = arith.constant 0 : index
      %28 = vector.load %arg7[%c0_14, %c0_15] : memref<32x1xf32, #tpu.memory_space<vmem>>, vector<32x1xf32>
      %29 = arith.addf %28, %15 : vector<32x1xf32>
      %c0_16 = arith.constant 0 : index
      %c0_17 = arith.constant 0 : index
      %30 = vector.load %arg7[%c0_16, %c0_17] : memref<32x1xf32, #tpu.memory_space<vmem>>, vector<32x1xf32>
      tpu.vector_store %arg7[%c0_16, %c0_17], %29 {strides = array<i32>} : memref<32x1xf32, #tpu.memory_space<vmem>>, vector<32x1xf32>,
    } else {
    }
    %c0_i32_8 = arith.constant 0 : i32
    %22 = arith.cmpi eq, %arg1, %c0_i32_8 : i32
    %23 = arith.extui %22 : i1 to i32
    %c0_i32_9 = arith.constant 0 : i32
    %24 = arith.cmpi ne, %23, %c0_i32_9 : i32
    scf.if %24 {
      %c0_10 = arith.constant 0 : index
      %c0_11 = arith.constant 0 : index
      %25 = vector.load %arg6[%c0_10, %c0_11] : memref<32x1xf32, #tpu.memory_space<vmem>>, vector<32x1xf32>
      %c0_12 = arith.constant 0 : index
      %c0_13 = arith.constant 0 : index
      %26 = vector.load %arg7[%c0_12, %c0_13] : memref<32x1xf32, #tpu.memory_space<vmem>>, vector<32x1xf32>
      %cst_14 = arith.constant 2.000000e+00 : f32
      %27 = vector.broadcast %cst_14 : f32 to vector<32x1xf32>
      %28 = arith.mulf %27, %25 : vector<32x1xf32>
      %cst_15 = arith.constant 2.000000e-03 : f32
      %29 = vector.broadcast %cst_15 : f32 to vector<32x1xf32>
      %30 = arith.addf %26, %29 : vector<32x1xf32>
      %31 = arith.divf %28, %30 : vector<32x1xf32>
      %cst_16 = arith.constant 1.000000e+00 : f32
      %32 = vector.broadcast %cst_16 : f32 to vector<32x1xf32>
      %33 = arith.subf %32, %31 : vector<32x1xf32>
      %c0_17 = arith.constant 0 : index
      %c0_18 = arith.constant 0 : index
      %34 = vector.load %arg4[%c0_17, %c0_18] : memref<32x1xf32, #tpu.memory_space<vmem>>, vector<32x1xf32>
      tpu.vector_store %arg4[%c0_17, %c0_18], %33 {strides = array<i32>} : memref<32x1xf32, #tpu.memory_space<vmem>>, vector<32x1xf32>,
      %cst_19 = arith.constant 2.000000e+00 : f32
      %35 = vector.broadcast %cst_19 : f32 to vector<32x1xf32>
      %36 = arith.mulf %35, %25 : vector<32x1xf32>
      %37 = arith.subf %26, %36 : vector<32x1xf32>
      %cst_20 = arith.constant 3.906250e-03 : f32
      %38 = vector.broadcast %cst_20 : f32 to vector<32x1xf32>
      %39 = arith.mulf %37, %38 : vector<32x1xf32>
      %c0_21 = arith.constant 0 : index
      %c0_22 = arith.constant 0 : index
      %40 = vector.load %arg5[%c0_21, %c0_22] : memref<32x1xf32, #tpu.memory_space<vmem>>, vector<32x1xf32>
      tpu.vector_store %arg5[%c0_21, %c0_22], %39 {strides = array<i32>} : memref<32x1xf32, #tpu.memory_space<vmem>>, vector<32x1xf32>,
    } else {
    }
    return
  }
  func.func @transform_0(%arg0: i32, %arg1: i32) -> (i32, i32) {
    %c0_i32 = arith.constant 0 : i32
    return %arg0, %arg1 : i32, i32
  }
  func.func @transform_1(%arg0: i32, %arg1: i32) -> (i32, i32) {
    %c0_i32 = arith.constant 0 : i32
    return %arg0, %arg1 : i32, i32
  }
  func.func @transform_2(%arg0: i32, %arg1: i32) -> (i32, i32) {
    %c0_i32 = arith.constant 0 : i32
    %c0_i32_0 = arith.constant 0 : i32
    return %arg0, %c0_i32 : i32, i32
  }
  func.func @transform_3(%arg0: i32, %arg1: i32) -> (i32, i32) {
    %c0_i32 = arith.constant 0 : i32
    %c0_i32_0 = arith.constant 0 : i32
    return %arg0, %c0_i32 : i32, i32
  }
}

</mosaic_0001>

<bundles_post_ra>
// kernel: _dice_hd_forward.1
= control target key start
LH: loop header
LB: loop body
LE: loop exit
PB: predicated region body
PF: predicated region fallthrough
CT: control target
= control target key end

     0   :  { %s712_s0 = inlined_call_operand.vmem [shape: bf16[32,256], index: 0, kind: input, shape index: {}]   ;;  %s713_s1 = inlined_call_operand.vmem [shape: s8[32,256], index: 1, kind: input, shape index: {}]   ;;  %s714_s3 = inlined_call_operand.vmem [shape: f32[32,1], index: 3, kind: output, shape index: {1}]   ;;  %s715_s2 = inlined_call_operand.vmem [shape: f32[32,1], index: 2, kind: output, shape index: {0}]  }
   0x1   :  { %v13_v0 = vld [vmem:[%s712_s0] sm:$0xff]  ;;  %v15_v3 = vld [vmem:[%s712_s0 + $0x10] sm:$0xff]  ;;  %v14_v6 = vld [vmem:[%s712_s0 + $0x8] sm:$0xff] }
   0x2   :  { %v17_v1 = vunpack.c.l.bf16 %v13_v0  ;;  %v18_v2 = vunpack.c.h.bf16 %v13_v0  ;;  %v21_v4 = vunpack.c.l.bf16 %v15_v3  ;;  %v22_v5 = vunpack.c.h.bf16 %v15_v3  ;;  %v16_v13 = vld [vmem:[%s712_s0 + $0x18] sm:$0xff]  ;;  %v476_v14 = vld [vmem:[%s713_s1] sm:$0xff]  ;;  %v481_v15 = vld [vmem:[%s713_s1 + $0x8] sm:$0xff] }
   0x3   :  { %v19_v11 = vunpack.c.l.bf16 %v14_v6  ;;  %v20_v12 = vunpack.c.h.bf16 %v14_v6  ;;  %v23_v18 = vunpack.c.l.bf16 %v16_v13  ;;  %v179_v19 = vunpack.c.0.s8 %v476_v14 }
   0x4   :  { %v393_v7 = vmul.f32 -1.442695, %v17_v1  ;;  %v394_v8 = vmul.f32 -1.442695, %v18_v2  ;;  %v397_v9 = vmul.f32 -1.442695, %v21_v4  ;;  %v24_v20 = vunpack.c.h.bf16 %v16_v13 }
   0x5   :  { %v398_v10 = vmul.f32 -1.442695, %v22_v5  ;;  %v395_v16 = vmul.f32 -1.442695, %v19_v11  ;;  %v396_v17 = vmul.f32 -1.442695, %v20_v12  ;;  %v180_v21 = vunpack.c.0.s8 %v481_v15 }
   0x6   :  { %401 = vpow2.f32 %v393_v7  ;;  %v183_v22 = vunpack.c.2.s8 %v476_v14  ;;  %v184_v23 = vunpack.c.2.s8 %v481_v15  ;;  %v181_v25 = vunpack.c.1.s8 %v476_v14 }
   0x7   :  { %403 = vpow2.f32 %v394_v8  ;;  %v182_v26 = vunpack.c.1.s8 %v481_v15  ;;  %v399_v29 = vmul.f32 -1.442695, %v23_v18  ;;  %v493_v32 = vcvt.s32.f32 %v179_v19 }
   0x8   :  { %405 = vpow2.f32 %v397_v9  ;;  %v400_v33 = vmul.f32 -1.442695, %v24_v20  ;;  %v496_v35 = vcvt.s32.f32 %v180_v21  ;;  %v498_v36 = vcvt.s32.f32 %v183_v22 }
   0x9   :  { %407 = vpow2.f32 %v398_v10  ;;  %v500_v37 = vcvt.s32.f32 %v184_v23  ;;  %v504_v40 = vcvt.s32.f32 %v181_v25  ;;  %v506_v41 = vcvt.s32.f32 %v182_v26 }
   0xa   :  { %409 = vpow2.f32 %v395_v16 }
   0xb   :  { %411 = vpow2.f32 %v396_v17 }
   0xc   :  { %v402_v24 = vpop.eup %401 }
   0xd   :  { %v404_v27 = vpop.eup %403  ;;  %v489_v28 = vadd.f32 1.0, %v402_v24 }
   0xe   :  { %v406_v30 = vpop.eup %405  ;;  %v491_v31 = vadd.f32 1.0, %v404_v27 }
   0xf   :  { %v408_v34 = vpop.eup %407  ;;  %413 = vrcp.f32 %v489_v28  ;;  %v66_v39 = vand.u32 2147483647, %v489_v28  ;;  %v68_v43 = vand.u32 2147483648, %v489_v28  ;;  %v509_v44 = vadd.f32 1.0, %v406_v30 }
  0x10   :  { %v410_v38 = vpop.eup %409  ;;  %415 = vrcp.f32 %v491_v31  ;;  %v511_v45 = vadd.f32 1.0, %v408_v34  ;;  %v81_v46 = vand.u32 2147483647, %v491_v31  ;;  %v83_v47 = vand.u32 2147483648, %v491_v31 }
  0x11   :  { %v412_v42 = vpop.eup %411  ;;  %417 = vpow2.f32 %v399_v29  ;;  %v515_v48 = vadd.f32 1.0, %v410_v38  ;;  %vm62_vm0 = vweird.f32 %v489_v28  ;;  %vm77_vm1 = vweird.f32 %v491_v31 }
  0x12   :  { %419 = vpow2.f32 %v400_v33  ;;  %v128_v49 = vand.u32 2147483648, %v509_v44  ;;  %vm521_vm2 = vcmp.eq.f32.partialorder %v66_v39, 8.507059e+37  ;;  %v126_v51 = vand.u32 2147483647, %v509_v44 }
  0x13   :  { %421 = vrcp.f32 %v509_v44  ;;  %v527_v52 = vadd.f32 1.0, %v412_v42  ;;  %v69_v54 = vor.u32 1.1754944e-38, %v68_v43  ;;  %v141_v55 = vand.u32 2147483647, %v511_v45 }
  0x14   :  { %423 = vrcp.f32 %v511_v45  ;;  %v143_v56 = vand.u32 2147483648, %v511_v45  ;;  %vm533_vm3 = vcmp.eq.f32.partialorder %v81_v46, 8.507059e+37  ;;  %v84_v60 = vor.u32 1.1754944e-38, %v83_v47 }
  0x15   :  { %v414_v53 = vpop.eup %413  ;;  %425 = vrcp.f32 %v515_v48  ;;  %vm122_vm4 = vweird.f32 %v509_v44  ;;  %v129_v63 = vor.u32 1.1754944e-38, %v128_v49  ;;  %vm137_vm5 = vweird.f32 %v511_v45 }
  0x16   :  { %v416_v57 = vpop.eup %415  ;;  %v58_v58 = vmul.f32 %v414_v53, %v489_v28  ;;  %v98_v0 = vand.u32 2147483648, %v515_v48  ;;  %vm63_vm6 = vweird.f32 %v414_v53  ;;  %vm541_vm7 = vcmp.eq.f32.partialorder %v126_v51, 8.507059e+37 }
  0x17   :  { %v418_v61 = vpop.eup %417  ;;  %v73_v62 = vmul.f32 %v416_v57, %v491_v31  ;;  %vm92_vm8 = vweird.f32 %v515_v48  ;;  %v96_v4 = vand.u32 2147483647, %v515_v48  ;;  %427 = vrcp.f32 %v527_v52  ;;  %vm560_vm12 = vmor %vm62_vm0, %vm63_vm6 }
  0x18   :  { %v420_v1 = vpop.eup %419  ;;  %v59_v2 = vsub.f32 1.0, %v58_v58  ;;  %vm78_vm9 = vweird.f32 %v416_v57  ;;  %vm548_vm10 = vcmp.eq.f32.partialorder %v141_v55, 8.507059e+37  ;;  %v144_v8 = vor.u32 1.1754944e-38, %v143_v56 }
  0x19   :  { %v422_v5 = vpop.eup %421  ;;  %v74_v6 = vsub.f32 1.0, %v73_v62  ;;  %v553_v12 = vor.u32 1.1754944e-38, %v98_v0  ;;  %vm107_vm11 = vweird.f32 %v527_v52  ;;  %v111_v13 = vand.u32 2147483647, %v527_v52  ;;  %vm569_vm14 = vmor %vm77_vm1, %vm78_vm9 }
  0x1a   :  { %v424_v9 = vpop.eup %423  ;;  %v60_v10 = vmul.f32 %v414_v53, %v59_v2  ;;  %v118_v11 = vmul.f32 %v422_v5, %v509_v44  ;;  %vm123_vm13 = vweird.f32 %v422_v5  ;;  %v113_v20 = vand.u32 2147483648, %v527_v52 }
  0x1b   :  { %v426_v16 = vpop.eup %425  ;;  %v75_v18 = vmul.f32 %v416_v57, %v74_v6  ;;  %v133_v19 = vmul.f32 %v424_v9, %v511_v45  ;;  %vm138_vm15 = vweird.f32 %v424_v9  ;;  %vm574_vm0 = vcmp.eq.f32.partialorder %v96_v4, 8.507059e+37  ;;  %vm591_vm1 = vmor %vm122_vm4, %vm123_vm13 }
  0x1c   :  { %v61_v21 = vadd.f32 %v414_v53, %v60_v10  ;;  %v119_v23 = vsub.f32 1.0, %v118_v11  ;;  %v88_v24 = vmul.f32 %v426_v16, %v515_v48  ;;  %vm93_vm6 = vweird.f32 %v426_v16 }
  0x1d   :  { %v76_v26 = vadd.f32 %v416_v57, %v75_v18  ;;  %v134_v27 = vsub.f32 1.0, %v133_v19  ;;  %v578_v28 = vadd.f32 1.0, %v418_v61  ;;  %v428_v29 = vpop.eup %427  ;;  %v582_v34 = vadd.f32 1.0, %v420_v1  ;;  %vm618_vm4 = vmor %vm92_vm8, %vm93_vm6 }
  0x1e   :  { %v65_v30 = vsel %vm560_vm12, %v414_v53, %v61_v21  ;;  %v120_v31 = vmul.f32 %v422_v5, %v119_v23  ;;  %v89_v33 = vsub.f32 1.0, %v88_v24  ;;  %v103_v46 = vmul.f32 %v428_v29, %v527_v52 }
  0x1f   :  { %v70_v38 = vsel %vm521_vm2, %v69_v54, %v65_v30  ;;  %v80_v39 = vsel %vm569_vm14, %v416_v57, %v76_v26  ;;  %v135_v43 = vmul.f32 %v424_v9, %v134_v27  ;;  %vm602_vm2 = vmor %vm137_vm5, %vm138_vm15  ;;  %429 = vrcp.f32 %v578_v28 }
  0x20   :  { %v85_v47 = vsel %vm533_vm3, %v84_v60, %v80_v39  ;;  %v195_v49 = vmul.f32 %v493_v32, %v70_v38  ;;  %v121_v50 = vadd.f32 %v422_v5, %v120_v31  ;;  %v215_v44 = vmul.f32 %v70_v38, %v70_v38 }
  0x21   :  { %v196_v53 = vmul.f32 %v496_v35, %v85_v47  ;;  %v136_v54 = vadd.f32 %v424_v9, %v135_v43  ;;  %v216_v55 = vmul.f32 %v85_v47, %v85_v47  ;;  %v90_v56 = vmul.f32 %v426_v16, %v89_v33 }
  0x22   :  { %v125_v57 = vsel %vm591_vm1, %v422_v5, %v121_v50  ;;  %v223_v58 = vadd.f32 %v215_v44, %v493_v32  ;;  %v104_v59 = vsub.f32 1.0, %v103_v46  ;;  %vm108_vm3 = vweird.f32 %v428_v29 }
  0x23   :  { %v203_v60 = vadd.f32 %v196_v53, %v195_v49  ;;  %v130_v45 = vsel %vm541_vm7, %v129_v63, %v125_v57  ;;  %v140_v61 = vsel %vm602_vm2, %v424_v9, %v136_v54  ;;  %v224_v62 = vadd.f32 %v216_v55, %v496_v35  ;;  %vm109_vm5 = vmor %vm107_vm11, %vm108_vm3 }
  0x24   :  { %v145_v32 = vsel %vm548_vm10, %v144_v8, %v140_v61  ;;  %v219_v1 = vmul.f32 %v130_v45, %v130_v45  ;;  %v91_v2 = vadd.f32 %v426_v16, %v90_v56  ;;  %v105_v4 = vmul.f32 %v428_v29, %v104_v59 }
  0x25   :  { %204 = vadd.xlane.f32.xlu2 %v203_v60  ;;  %v220_v63 = vmul.f32 %v145_v32, %v145_v32  ;;  %v231_v3 = vadd.f32 %v224_v62, %v223_v58  ;;  %v114_v35 = vor.u32 1.1754944e-38, %v113_v20  ;;  %vm112_vm7 = vcmp.eq.f32.partialorder %v111_v13, 8.507059e+37  ;;  %v430_v18 = vpop.eup %429 }
  0x26   :  { %v227_v48 = vadd.f32 %v219_v1, %v498_v36  ;;  %v95_v5 = vsel %vm618_vm4, %v426_v16, %v91_v2  ;;  %v106_v6 = vadd.f32 %v428_v29, %v105_v4  ;;  %431 = vrcp.f32 %v582_v34 }
  0x27   :  { %v228_v7 = vadd.f32 %v220_v63, %v500_v37  ;;  %232 = vadd.xlane.f32.xlu0 %v231_v3  ;;  %v100_v8 = vsel %vm574_vm0, %v553_v12, %v95_v5  ;;  %v148_v20 = vmul.f32 %v430_v18, %v578_v28  ;;  %vm152_vm8 = vweird.f32 %v578_v28 }
  0x28   :  { %v110_v52 = vsel %vm109_vm5, %v428_v29, %v106_v6  ;;  %v197_v9 = vmul.f32 %v504_v40, %v100_v8  ;;  %v217_v16 = vmul.f32 %v100_v8, %v100_v8  ;;  %v158_v12 = vand.u32 2147483648, %v578_v28 }
  0x29   :  { %v237_v10 = vadd.f32 %v228_v7, %v227_v48  ;;  %v115_v11 = vsel %vm112_vm7, %v114_v35, %v110_v52  ;;  %v149_v24 = vsub.f32 1.0, %v148_v20  ;;  %vm153_vm9 = vweird.f32 %v430_v18 }
  0x2a   :  { %v198_v17 = vmul.f32 %v506_v41, %v115_v11  ;;  %v218_v13 = vmul.f32 %v115_v11, %v115_v11  ;;  %v225_v22 = vadd.f32 %v217_v16, %v504_v40  ;;  %v156_v25 = vand.u32 2147483647, %v578_v28  ;;  %vm650_vm12 = vmor %vm152_vm8, %vm153_vm9 }
  0x2b   :  { %238 = vadd.xlane.f32.xlu1 %v237_v10  ;;  %vm167_vm10 = vweird.f32 %v582_v34  ;;  %v173_v27 = vand.u32 2147483648, %v582_v34  ;;  %v185_v29 = vunpack.c.3.s8 %v476_v14  ;;  %v150_v31 = vmul.f32 %v430_v18, %v149_v24 }
  0x2c   :  { %v206_v19 = vadd.f32 %v198_v17, %v197_v9  ;;  %v432_v21 = vpop.eup %431  ;;  %v226_v23 = vadd.f32 %v218_v13, %v506_v41  ;;  %v171_v40 = vand.u32 2147483647, %v582_v34  ;;  %v159_v38 = vor.u32 1.1754944e-38, %v158_v12 }
  0x2d   :  { %v163_v26 = vmul.f32 %v432_v21, %v582_v34  ;;  %vm168_vm11 = vweird.f32 %v432_v21  ;;  %v199_v39 = vmul.f32 %v498_v36, %v130_v45  ;;  %v200_v42 = vmul.f32 %v500_v37, %v145_v32 }
  0x2e   :  { %207 = vadd.xlane.f32.xlu2 %v206_v19  ;;  %v234_v30 = vadd.f32 %v226_v23, %v225_v22  ;;  %v151_v43 = vadd.f32 %v430_v18, %v150_v31  ;;  %vm157_vm13 = vcmp.eq.f32.partialorder %v156_v25, 8.507059e+37  ;;  %v186_v46 = vunpack.c.3.s8 %v481_v15  ;;  %vm169_vm14 = vmor %vm167_vm10, %vm168_vm11 }
  0x2f   :  { %v164_v33 = vsub.f32 1.0, %v163_v26  ;;  %v174_v47 = vor.u32 1.1754944e-38, %v173_v27  ;;  %vm172_vm15 = vcmp.eq.f32.partialorder %v171_v40, 8.507059e+37  ;;  %v193_v50 = vcvt.s32.f32 %v185_v29 }
  0x30   :  { %235 = vadd.xlane.f32.xlu0 %v234_v30  ;;  %v155_v28 = vsel %vm650_vm12, %v430_v18, %v151_v43  ;;  %v209_v44 = vadd.f32 %v200_v42, %v199_v39  ;;  %v194_v53 = vcvt.s32.f32 %v186_v46  ;;  %vm247_vm0 = vcmask 7168  }
  0x31   :  { %v165_v14 = vmul.f32 %v432_v21, %v164_v33  ;;  %v160_v51 = vsel %vm157_vm13, %v159_v38, %v155_v28 }
  0x32   :  { %v221_v37 = vmul.f32 %v160_v51, %v160_v51  ;;  %v201_v34 = vmul.f32 %v193_v50, %v160_v51 }
  0x33   :  { %v166_v49 = vadd.f32 %v432_v21, %v165_v14 }
  0x34   :  { %v229_v56 = vadd.f32 %v221_v37, %v193_v50 }
  0x35   :  { %v170_v36 = vsel %vm169_vm14, %v432_v21, %v166_v49 }
  0x36   :  { %v175_v54 = vsel %vm172_vm15, %v174_v47, %v170_v36 }
  0x37   :  { %v222_v55 = vmul.f32 %v175_v54, %v175_v54  ;;  %v202_v58 = vmul.f32 %v194_v53, %v175_v54 }
  0x38   :  { %210 = vadd.xlane.f32.xlu0 %v209_v44 }
  0x39   :  { %v230_v15 = vadd.f32 %v222_v55, %v194_v53  ;;  %v212_v59 = vadd.f32 %v202_v58, %v201_v34 }
  0x3b   :  { %v240_v57 = vadd.f32 %v230_v15, %v229_v56 }
  0x3d   :  { %241 = vadd.xlane.f32.xlu1 %v240_v57 }
  0x45   :  { %213 = vadd.xlane.f32.xlu1 %v212_v59 }
  0x98   :  { %v205_v60 = vpop.xlane.xlu2 %204 }
  0x99   :  { %248 = vst.msk [vmem:[#allocation2] sm:$0xff] %vm247_vm0, %v205_v60 }
  0x9a   :  { %v233_v45 = vpop.xlane.xlu0 %232 }
  0x9b   :  { %252 = vst.msk [vmem:[#allocation3] sm:$0xff] %vm247_vm0, %v233_v45 }
  0x9e   :  { %v239_v61 = vpop.xlane.xlu1 %238 }
  0x9f   :  { %254 = vst.msk [vmem:[#allocation3 + $0x10] sm:$0xff] %vm247_vm0, %v239_v61 }
  0xa0   :  { %v288_v62 = vld [vmem:[#allocation2] sm:$0xff] }
  0xa1   :  { %v296_v0 = vmul.f32 2.0, %v288_v62  ;;  %v208_v32 = vpop.xlane.xlu2 %207 }
  0xa2   :  { %v292_v1 = vld [vmem:[#allocation3] sm:$0xff]  ;;  %249 = vst.msk [vmem:[#allocation2 + $0x8] sm:$0xff] %vm247_vm0, %v208_v32 }
  0xa3   :  { %v300_v2 = vadd.f32 0.002, %v292_v1  ;;  %v373_v4 = vsub.f32 %v292_v1, %v296_v0  ;;  %v236_v63 = vpop.xlane.xlu0 %235 }
  0xa4   :  { %253 = vst.msk [vmem:[#allocation3 + $0x8] sm:$0xff] %vm247_vm0, %v236_v63 }
  0xa5   :  { %433 = vrcp.f32 %v300_v2  ;;  %v377_v35 = vmul.f32 0.00390625, %v373_v4  ;;  %v313_v16 = vand.u32 2147483647, %v300_v2  ;;  %v315_v13 = vand.u32 2147483648, %v300_v2 }
  0xa6   :  { %v294_v3 = vld [vmem:[#allocation3 + $0x10] sm:$0xff]  ;;  %vm309_vm1 = vweird.f32 %v300_v2 }
  0xa7   :  { %v302_v48 = vadd.f32 0.002, %v294_v3  ;;  %381 = vst.msk [vmem:[%s714_s3] sm:$0xff] %vm247_vm0, %v377_v35  ;;  %vm314_vm3 = vcmp.eq.f32.partialorder %v313_v16, 8.507059e+37  ;;  %v316_v24 = vor.u32 1.1754944e-38, %v315_v13 }
  0xa9   :  { %435 = vrcp.f32 %v302_v48  ;;  %v289_v5 = vld [vmem:[#allocation2 + $0x8] sm:$0xff]  ;;  %v345_v25 = vand.u32 2147483648, %v302_v48  ;;  %v343_v29 = vand.u32 2147483647, %v302_v48  ;;  %vm339_vm5 = vweird.f32 %v302_v48 }
  0xaa   :  { %v670_v6 = vmul.f32 2.0, %v289_v5 }
  0xab   :  { %v434_v7 = vpop.eup %433  ;;  %v293_v52 = vld [vmem:[#allocation3 + $0x8] sm:$0xff]  ;;  %v211_v9 = vpop.xlane.xlu0 %210  ;;  %v346_v42 = vor.u32 1.1754944e-38, %v345_v25  ;;  %vm344_vm8 = vcmp.eq.f32.partialorder %v343_v29, 8.507059e+37 }
  0xac   :  { %v305_v8 = vmul.f32 %v434_v7, %v300_v2  ;;  %v672_v10 = vadd.f32 0.002, %v293_v52  ;;  %v374_v11 = vsub.f32 %v293_v52, %v670_v6  ;;  %250 = vst.msk [vmem:[#allocation2 + $0x10] sm:$0xff] %vm247_vm0, %v211_v9  ;;  %vm310_vm6 = vweird.f32 %v434_v7 }
  0xad   :  { %vm311_vm2 = vmor %vm309_vm1, %vm310_vm6 }
  0xae   :  { %v306_v17 = vsub.f32 1.0, %v305_v8  ;;  %437 = vrcp.f32 %v672_v10  ;;  %v378_v21 = vmul.f32 0.00390625, %v374_v11  ;;  %v328_v49 = vand.u32 2147483647, %v672_v10 }
  0xaf   :  { %v436_v18 = vpop.eup %435  ;;  %v330_v50 = vand.u32 2147483648, %v672_v10  ;;  %vm324_vm10 = vweird.f32 %v672_v10 }
  0xb0   :  { %v335_v19 = vmul.f32 %v436_v18, %v302_v48  ;;  %v307_v20 = vmul.f32 %v434_v7, %v306_v17  ;;  %v242_v12 = vpop.xlane.xlu1 %241  ;;  %382 = vst.msk [vmem:[%s714_s3 + $0x8] sm:$0xff] %vm247_vm0, %v378_v21  ;;  %vm340_vm4 = vweird.f32 %v436_v18  ;;  %vm329_vm12 = vcmp.eq.f32.partialorder %v328_v49, 8.507059e+37 }
  0xb1   :  { %255 = vst.msk [vmem:[#allocation3 + $0x18] sm:$0xff] %vm247_vm0, %v242_v12  ;;  %vm341_vm7 = vmor %vm339_vm5, %vm340_vm4  ;;  %v331_v56 = vor.u32 1.1754944e-38, %v330_v50 }
  0xb2   :  { %v308_v22 = vadd.f32 %v434_v7, %v307_v20  ;;  %v336_v23 = vsub.f32 1.0, %v335_v19 }
  0xb3   :  { %v290_v30 = vld [vmem:[#allocation2 + $0x10] sm:$0xff] }
  0xb4   :  { %v312_v26 = vsel %vm311_vm2, %v434_v7, %v308_v22  ;;  %v337_v27 = vmul.f32 %v436_v18, %v336_v23  ;;  %v438_v31 = vpop.eup %437  ;;  %v298_v40 = vmul.f32 2.0, %v290_v30 }
  0xb5   :  { %v317_v33 = vsel %vm314_vm3, %v316_v24, %v312_v26  ;;  %v320_v38 = vmul.f32 %v438_v31, %v672_v10  ;;  %vm325_vm9 = vweird.f32 %v438_v31 }
  0xb6   :  { %v318_v41 = vmul.f32 %v317_v33, %v296_v0  ;;  %v338_v39 = vadd.f32 %v436_v18, %v337_v27  ;;  %v375_v43 = vsub.f32 %v294_v3, %v298_v40  ;;  %vm326_vm11 = vmor %vm324_vm10, %vm325_vm9 }
  0xb7   :  { %v321_v46 = vsub.f32 1.0, %v320_v38 }
  0xb8   :  { %v364_v14 = vsub.f32 1.0, %v318_v41  ;;  %v342_v47 = vsel %vm341_vm7, %v436_v18, %v338_v39  ;;  %v295_v28 = vld [vmem:[#allocation3 + $0x18] sm:$0xff]  ;;  %v214_v51 = vpop.xlane.xlu1 %213  ;;  %v379_v36 = vmul.f32 0.00390625, %v375_v43 }
  0xb9   :  { %v347_v44 = vsel %vm344_vm8, %v346_v42, %v342_v47  ;;  %v303_v53 = vadd.f32 0.002, %v295_v28  ;;  %v322_v37 = vmul.f32 %v438_v31, %v321_v46  ;;  %251 = vst.msk [vmem:[#allocation2 + $0x18] sm:$0xff] %vm247_vm0, %v214_v51 }
  0xba   :  { %v348_v54 = vmul.f32 %v347_v44, %v298_v40  ;;  %369 = vst.msk [vmem:[%s715_s2] sm:$0xff] %vm247_vm0, %v364_v14 }
  0xbb   :  { %439 = vrcp.f32 %v303_v53  ;;  %v323_v55 = vadd.f32 %v438_v31, %v322_v37  ;;  %383 = vst.msk [vmem:[%s714_s3 + $0x10] sm:$0xff] %vm247_vm0, %v379_v36  ;;  %v360_v1 = vand.u32 2147483648, %v303_v53  ;;  %v358_v63 = vand.u32 2147483647, %v303_v53 }
  0xbc   :  { %v366_v15 = vsub.f32 1.0, %v348_v54  ;;  %vm354_vm14 = vweird.f32 %v303_v53 }
  0xbd   :  { %v327_v57 = vsel %vm326_vm11, %v438_v31, %v323_v55  ;;  %v361_v35 = vor.u32 1.1754944e-38, %v360_v1  ;;  %vm359_vm6 = vcmp.eq.f32.partialorder %v358_v63, 8.507059e+37 }
  0xbe   :  { %v332_v34 = vsel %vm329_vm12, %v331_v56, %v327_v57  ;;  %371 = vst.msk [vmem:[%s715_s2 + $0x10] sm:$0xff] %vm247_vm0, %v366_v15 }
  0xbf   :  { %v333_v58 = vmul.f32 %v332_v34, %v670_v6 }
  0xc0   :  { %v291_v59 = vld [vmem:[#allocation2 + $0x18] sm:$0xff] }
  0xc1   :  { %v440_v60 = vpop.eup %439  ;;  %v365_v45 = vsub.f32 1.0, %v333_v58  ;;  %v299_v61 = vmul.f32 2.0, %v291_v59 }
  0xc2   :  { %v350_v62 = vmul.f32 %v440_v60, %v303_v53  ;;  %vm355_vm13 = vweird.f32 %v440_v60 }
  0xc3   :  { %370 = vst.msk [vmem:[%s715_s2 + $0x8] sm:$0xff] %vm247_vm0, %v365_v45  ;;  %v376_v0 = vsub.f32 %v295_v28, %v299_v61  ;;  %vm356_vm15 = vmor %vm354_vm14, %vm355_vm13 }
  0xc4   :  { %v351_v32 = vsub.f32 1.0, %v350_v62 }
  0xc5   :  { %v380_v2 = vmul.f32 0.00390625, %v376_v0 }
  0xc6   :  { %v352_v4 = vmul.f32 %v440_v60, %v351_v32 }
  0xc7   :  { %384 = vst.msk [vmem:[%s714_s3 + $0x18] sm:$0xff] %vm247_vm0, %v380_v2 }
  0xc8   :  { %v353_v3 = vadd.f32 %v440_v60, %v352_v4 }
  0xca   :  { %v357_v48 = vsel %vm356_vm15, %v440_v60, %v353_v3 }
  0xcb   :  { %v362_v5 = vsel %vm359_vm6, %v361_v35, %v357_v48 }
  0xcc   :  { %v363_v6 = vmul.f32 %v362_v5, %v299_v61 }
  0xce   :  { %v367_v7 = vsub.f32 1.0, %v363_v6 }
  0xd0   :  { %372 = vst.msk [vmem:[%s715_s2 + $0x18] sm:$0xff] %vm247_vm0, %v367_v7 }

</bundles_post_ra>
